<compile_context>
chip_gen: v5e
topology: v5e:2x2
jax: 0.10.0
libtpu: 0.0.40
codegen_flags: <defaults>
</compile_context>

<pallas_src>
import jax
import jax.numpy as jnp
from jax.experimental import pallas as pl
from jax.experimental.pallas import tpu as pltpu


def _make_hinge_kernel(rows, block_rows, needs_row_mask):
    """Streaming hinge-loss sum over a (rows, cols) slab, blocked by rows."""

    def kernel(pos_ref, neg_ref, out_ref, acc_ref):
        j = pl.program_id(0)
        last = pl.num_programs(0) - 1

        @pl.when(j == 0)
        def _init():
            acc_ref[...] = jnp.zeros_like(acc_ref)

        # Load in native dtype, widen to f32 in-registers (v5e VPU has no bf16).
        pos = pos_ref[...].astype(jnp.float32)
        neg = neg_ref[...].astype(jnp.float32)
        losses = jnp.maximum(1.0 - (neg - pos), 0.0)

        if needs_row_mask:
            # Only the final (partial) row-block contains undefined rows from
            # the clipped edge DMA; every interior block takes the unmasked
            # fast path, so the mask cost is paid on exactly one grid step.
            @pl.when(j != last)
            def _fast():
                acc_ref[...] += losses

            @pl.when(j == last)
            def _masked():
                # Row-only compare against a scalar bound -- no per-element
                # integer multiply.
                r = jax.lax.broadcasted_iota(jnp.int32, losses.shape, 0)
                valid_rows = rows - j * block_rows  # scalar
                acc_ref[...] += jnp.where(r < valid_rows, losses, 0.0)
        else:
            acc_ref[...] += losses

        # Single expensive cross-lane/sublane reduction, once at the end.
        @pl.when(j == last)
        def _finalize():
            out_ref[0, 0] = jnp.sum(acc_ref[...])

    return kernel


def hinge_loss(dist_pos, dist_neg, reduction="sum", *, cols=1024, block_rows=512):
    """Pallas HingeLoss forward. Returns a float32 scalar."""
    pos = jnp.asarray(dist_pos).reshape(-1)
    neg = jnp.asarray(dist_neg).reshape(-1)
    assert pos.shape == neg.shape
    n = int(pos.shape[0])
    assert 0 < n < 2**31  # row/element indices are int32 in-kernel

    cdiv = lambda a, b: -(-a // b)

    rows = n // cols
    n_main = rows * cols
    tail = n - n_main

    total = jnp.float32(0.0)

    if rows > 0:
        # Exact-multiple prefix only; when n % cols == 0 this reshape is a
        # zero-copy bitcast of the original buffer (no padded copies in HBM).
        if tail:
            pos_main, neg_main = pos[:n_main], neg[:n_main]
        else:
            pos_main, neg_main = pos, neg
        pos2 = pos_main.reshape(rows, cols)
        neg2 = neg_main.reshape(rows, cols)

        # ~2 MiB f32 per input per step at the default; full-array block if
        # the input is small (full-dim block is always a legal block shape).
        br = block_rows if rows >= block_rows else rows
        num_blocks = cdiv(rows, br)
        needs_row_mask = (num_blocks * br) != rows

        kernel = _make_hinge_kernel(rows, br, needs_row_mask)

        itemsize = jnp.dtype(pos2.dtype).itemsize
        cost = pl.CostEstimate(
            flops=3 * rows * cols,
            transcendentals=0,
            bytes_accessed=2 * rows * cols * itemsize + 4,
        )

        partial = pl.pallas_call(
            kernel,
            out_shape=jax.ShapeDtypeStruct((1, 1), jnp.float32),
            grid_spec=pltpu.PrefetchScalarGridSpec(
                num_scalar_prefetch=0,
                grid=(num_blocks,),
                in_specs=[
                    pl.BlockSpec((br, cols), lambda j: (j, 0)),
                    pl.BlockSpec((br, cols), lambda j: (j, 0)),
                ],
                out_specs=pl.BlockSpec(
                    (1, 1), lambda j: (0, 0), memory_space=pltpu.SMEM
                ),
                scratch_shapes=[pltpu.VMEM((br, cols), jnp.float32)],
            ),
            compiler_params=pltpu.CompilerParams(
                dimension_semantics=("arbitrary",),
            ),
            cost_estimate=cost,
        )(pos2, neg2)
        total = total + partial[0, 0]

    if tail:
        # < cols leftover elements: a negligible plain-jnp epilogue instead of
        # padding (and re-writing) the full inputs in HBM.
        pos_t = pos[n_main:].astype(jnp.float32)
        neg_t = neg[n_main:].astype(jnp.float32)
        total = total + jnp.sum(jnp.maximum(1.0 - (neg_t - pos_t), 0.0))

    if reduction == "sum":
        return total
    return total / jnp.float32(n)  # 'mean' divides by the true element count


if __name__ == "__main__":
    key = jax.random.PRNGKey(0)
    k1, k2, k3, k4, k5, k6 = jax.random.split(key, 6)

    # Small demo matching the module's (B,) distance-vector inputs.
    batch = 8
    dist_pos = jax.random.uniform(k1, (batch,), jnp.float32)
    dist_neg = jax.random.uniform(k2, (batch,), jnp.float32)
    loss_sum = jax.block_until_ready(hinge_loss(dist_pos, dist_neg, "sum"))
    loss_mean = jax.block_until_ready(hinge_loss(dist_pos, dist_neg, "mean"))
    ref = jnp.maximum(1.0 - (dist_neg - dist_pos), 0.0)
    assert jnp.allclose(loss_sum, ref.sum(), rtol=1e-6, atol=1e-6)
    assert jnp.allclose(loss_mean, ref.mean(), rtol=1e-6, atol=1e-6)

    # Medium input: exercises the Pallas kernel (single full-array block,
    # unmasked fast path) plus the jnp tail epilogue.
    n_mid = 8 * 1024 + 37
    mp = jax.random.uniform(k3, (n_mid,), jnp.float32)
    mn = jax.random.uniform(k4, (n_mid,), jnp.float32)
    mid_sum = jax.block_until_ready(hinge_loss(mp, mn, "sum"))
    mid_ref = jnp.maximum(1.0 - (mn - mp), 0.0).sum()
    assert jnp.allclose(mid_sum, mid_ref, rtol=1e-5, atol=1e-3)

    # Larger check: multi-block grid, partial last row-block (in-kernel row
    # mask on exactly one grid step) and the <1024-element tail path.
    n_big = 700_001
    bp = jax.random.uniform(k5, (n_big,), jnp.float32)
    bn = jax.random.uniform(k6, (n_big,), jnp.float32)
    big_sum = jax.block_until_ready(hinge_loss(bp, bn, "sum"))
    big_mean = jax.block_until_ready(hinge_loss(bp, bn, "mean"))
    big_ref = jnp.maximum(1.0 - (bn - bp), 0.0)
    assert jnp.allclose(big_sum, big_ref.sum(), rtol=1e-4, atol=1e-2)
    assert jnp.allclose(big_mean, big_ref.mean(), rtol=1e-3, atol=1e-3)

    print("KERNEL_OK")
</pallas_src>

<mosaic_0001>
module attributes {stable_mosaic.version = 11 : i64} {
  func.func @kernel(%arg0: i32, %arg1: memref<8x1024xf32, #tpu.memory_space<vmem>>, %arg2: memref<8x1024xf32, #tpu.memory_space<vmem>>, %arg3: memref<1x1xf32, #tpu.memory_space<smem>>, %arg4: memref<8x1024xf32, #tpu.memory_space<vmem>>) attributes {dimension_semantics = [#tpu.dimension_semantics<arbitrary>], iteration_bounds = array<i64: 1>, scalar_prefetch = 0 : i64, scratch_operands = 1 : i64, tpu.core_type = #tpu.core_type<tc>, window_params = [{transform_indices = @transform_0, window_bounds = array<i64: 8, 1024>}, {transform_indices = @transform_1, window_bounds = array<i64: 8, 1024>}, {transform_indices = @transform_2, window_bounds = array<i64: 1, 1>}]} {
    %c0_i32 = arith.constant 0 : i32
    %0 = arith.cmpi eq, %arg0, %c0_i32 : i32
    %1 = arith.extui %0 : i1 to i32
    %c0_i32_0 = arith.constant 0 : i32
    %2 = arith.cmpi ne, %1, %c0_i32_0 : i32
    scf.if %2 {
      %cst_11 = arith.constant 0.000000e+00 : f32
      %16 = vector.broadcast %cst_11 : f32 to vector<8x1024xf32>
      %c0_12 = arith.constant 0 : index
      %c0_13 = arith.constant 0 : index
      %17 = vector.load %arg4[%c0_12, %c0_13] : memref<8x1024xf32, #tpu.memory_space<vmem>>, vector<8x1024xf32>
      tpu.vector_store %arg4[%c0_12, %c0_13], %16 {strides = array<i32>} : memref<8x1024xf32, #tpu.memory_space<vmem>>, vector<8x1024xf32>,
    } else {
    }
    %c0 = arith.constant 0 : index
    %c0_1 = arith.constant 0 : index
    %3 = vector.load %arg1[%c0, %c0_1] : memref<8x1024xf32, #tpu.memory_space<vmem>>, vector<8x1024xf32>
    %c0_2 = arith.constant 0 : index
    %c0_3 = arith.constant 0 : index
    %4 = vector.load %arg2[%c0_2, %c0_3] : memref<8x1024xf32, #tpu.memory_space<vmem>>, vector<8x1024xf32>
    %5 = arith.subf %4, %3 : vector<8x1024xf32>
    %cst = arith.constant 1.000000e+00 : f32
    %6 = vector.broadcast %cst : f32 to vector<8x1024xf32>
    %7 = arith.subf %6, %5 : vector<8x1024xf32>
    %cst_4 = arith.constant 0.000000e+00 : f32
    %8 = vector.broadcast %cst_4 : f32 to vector<8x1024xf32>
    %9 = arith.maximumf %7, %8 : vector<8x1024xf32>
    %c0_5 = arith.constant 0 : index
    %c0_6 = arith.constant 0 : index
    %10 = vector.load %arg4[%c0_5, %c0_6] : memref<8x1024xf32, #tpu.memory_space<vmem>>, vector<8x1024xf32>
    %11 = arith.addf %10, %9 : vector<8x1024xf32>
    %c0_7 = arith.constant 0 : index
    %c0_8 = arith.constant 0 : index
    %12 = vector.load %arg4[%c0_7, %c0_8] : memref<8x1024xf32, #tpu.memory_space<vmem>>, vector<8x1024xf32>
    tpu.vector_store %arg4[%c0_7, %c0_8], %11 {strides = array<i32>} : memref<8x1024xf32, #tpu.memory_space<vmem>>, vector<8x1024xf32>,
    %c0_i32_9 = arith.constant 0 : i32
    %13 = arith.cmpi eq, %arg0, %c0_i32_9 : i32
    %14 = arith.extui %13 : i1 to i32
    %c0_i32_10 = arith.constant 0 : i32
    %15 = arith.cmpi ne, %14, %c0_i32_10 : i32
    scf.if %15 {
      %c0_11 = arith.constant 0 : index
      %c0_12 = arith.constant 0 : index
      %16 = vector.load %arg4[%c0_11, %c0_12] : memref<8x1024xf32, #tpu.memory_space<vmem>>, vector<8x1024xf32>
      %17 = vector.shape_cast %16 : vector<8x1024xf32> to vector<1x8x1024xf32>
      %cst_13 = arith.constant dense<0.000000e+00> : vector<1xf32>
      %18 = vector.multi_reduction <add>, %17, %cst_13 [1, 2] : vector<1x8x1024xf32> to vector<1xf32>
      %19 = vector.shape_cast %18 : vector<1xf32> to vector<1x1x1xf32>
      %20 = vector.extract %19[0, 0, 0] : f32 from vector<1x1x1xf32>
      %c0_14 = arith.constant 0 : index
      %c0_15 = arith.constant 0 : index
      %21 = memref.load %arg3[%c0_14, %c0_15] : memref<1x1xf32, #tpu.memory_space<smem>>
      memref.store %20, %arg3[%c0_14, %c0_15] : memref<1x1xf32, #tpu.memory_space<smem>>
    } else {
    }
    return
  }
  func.func @transform_0(%arg0: i32) -> (i32, i32) {
    %c0_i32 = arith.constant 0 : i32
    %c0_i32_0 = arith.constant 0 : i32
    return %arg0, %c0_i32 : i32, i32
  }
  func.func @transform_1(%arg0: i32) -> (i32, i32) {
    %c0_i32 = arith.constant 0 : i32
    %c0_i32_0 = arith.constant 0 : i32
    return %arg0, %c0_i32 : i32, i32
  }
  func.func @transform_2(%arg0: i32) -> (i32, i32) {
    %c0_i32 = arith.constant 0 : i32
    %c0_i32_0 = arith.constant 0 : i32
    %c0_i32_1 = arith.constant 0 : i32
    return %c0_i32, %c0_i32_0 : i32, i32
  }
}

</mosaic_0001>

<bundles_post_ra>
// kernel: tpu_custom_call.1
= control target key start
LH: loop header
LB: loop body
LE: loop exit
PB: predicated region body
PF: predicated region fallthrough
CT: control target
= control target key end

     0   :  { %7 = vsyncpa [#allocation4], 0  ;;  %s260_s0 = inlined_call_operand.hbm [shape: f32[8,1024], index: 0, kind: input, shape index: {}]   ;;  %s261_s1 = inlined_call_operand.hbm [shape: f32[8,1024], index: 1, kind: input, shape index: {}]   ;;  %s262_s2 = inlined_call_operand.hbm [shape: f32[1,1], index: 2, kind: output, shape index: {}]  }
   0x1   :  { %8 = vsyncpa [#allocation7], 0 }
   0x2   :  { %9 = vsyncpa [#allocation5], 0  ;;  %s15_s11 = sshll.u32 %s260_s0, 4  ;;  %s233_s12 = smov [#allocation3]   ;;  %s16_s11 = int_to_ptr.hbm [resolvable:$true] %s15_s11 }
   0x3   :  { %s17_s13 = sshll.u32 %s233_s12, 4  ;;  %s26_s16 = sshll.u32 %s261_s1, 4  ;;  %s18_s13 = int_to_ptr.vmem [resolvable:$true] %s17_s13  ;;  %s27_s16 = int_to_ptr.hbm [resolvable:$true] %s26_s16 }
   0x4   :  { %20 = dma.hbm_to_vmem [thread:$0]  %s16_s11, 1024, %s18_s13, [#allocation4]  }
   0x5   :  { %s234_s17 = smov [#allocation6]  }
   0x6   :  { %s28_s18 = sshll.u32 %s234_s17, 4  ;;  %s29_s18 = int_to_ptr.vmem [resolvable:$true] %s28_s18 }
   0x7   :  { %31 = dma.hbm_to_vmem [thread:$0]  %s27_s16, 1024, %s29_s18, [#allocation7]  }
   0x8   :  { %227 = dma.done.wait [#allocation4], 1024  }
   0x9   :  { %228 = vsyncadd [#allocation4], 4294966272 }
   0xa   :  { %229 = dma.done.wait [#allocation7], 1024  }
   0xb   :  { %230 = vsyncadd [#allocation7], 4294966272  ;;  %v52_v0 = vld [vmem:[#allocation3] sm:$0xff]  ;;  %v53_v1 = vld [vmem:[#allocation3 + $0x8] sm:$0xff]  ;;  %s150_s19 = sshll.u32 %s262_s2, 4  ;;  %s235_s21 = smov [#allocation8]   ;;  %s151_s19 = int_to_ptr.hbm [resolvable:$true] %s150_s19 }
   0xc   :  { %v54_v2 = vld [vmem:[#allocation3 + $0x10] sm:$0xff]  ;;  %v55_v3 = vld [vmem:[#allocation3 + $0x18] sm:$0xff]  ;;  %v56_v4 = vld [vmem:[#allocation3 + $0x20] sm:$0xff] }
   0xd   :  { %v57_v5 = vld [vmem:[#allocation3 + $0x28] sm:$0xff]  ;;  %v60_v6 = vld [vmem:[#allocation6] sm:$0xff]  ;;  %v62_v8 = vld [vmem:[#allocation6 + $0x10] sm:$0xff] }
   0xe   :  { %v61_v7 = vld [vmem:[#allocation6 + $0x8] sm:$0xff]  ;;  %v63_v9 = vld [vmem:[#allocation6 + $0x18] sm:$0xff]  ;;  %v68_v10 = vsub.f32 %v60_v6, %v52_v0  ;;  %v64_v11 = vld [vmem:[#allocation6 + $0x20] sm:$0xff]  ;;  %v70_v14 = vsub.f32 %v62_v8, %v54_v2 }
   0xf   :  { %v65_v12 = vld [vmem:[#allocation6 + $0x28] sm:$0xff]  ;;  %v69_v13 = vsub.f32 %v61_v7, %v53_v1  ;;  %v71_v15 = vsub.f32 %v63_v9, %v55_v3  ;;  %v58_v16 = vld [vmem:[#allocation3 + $0x30] sm:$0xff]  ;;  %v72_v18 = vsub.f32 %v64_v11, %v56_v4  ;;  %v59_v24 = vld [vmem:[#allocation3 + $0x38] sm:$0xff] }
  0x10   :  { %v66_v17 = vld [vmem:[#allocation6 + $0x30] sm:$0xff]  ;;  %v76_v19 = vsub.f32 1.0, %v68_v10  ;;  %v73_v20 = vsub.f32 %v65_v12, %v57_v5  ;;  %v78_v22 = vsub.f32 1.0, %v70_v14  ;;  %v67_v25 = vld [vmem:[#allocation6 + $0x38] sm:$0xff] }
  0x11   :  { %v77_v21 = vsub.f32 1.0, %v69_v13  ;;  %v79_v23 = vsub.f32 1.0, %v71_v15  ;;  %v74_v27 = vsub.f32 %v66_v17, %v58_v16  ;;  %v80_v28 = vsub.f32 1.0, %v72_v18 }
  0x12   :  { %v84_v26 = vmax.f32 %v76_v19, 0.0  ;;  %v86_v30 = vmax.f32 %v78_v22, 0.0  ;;  %v75_v31 = vsub.f32 %v67_v25, %v59_v24  ;;  %v81_v32 = vsub.f32 1.0, %v73_v20 }
  0x13   :  { %v85_v29 = vmax.f32 %v77_v21, 0.0  ;;  %v87_v33 = vmax.f32 %v79_v23, 0.0  ;;  %v82_v35 = vsub.f32 1.0, %v74_v27  ;;  %v88_v36 = vmax.f32 %v80_v28, 0.0 }
  0x14   :  { %v83_v38 = vsub.f32 1.0, %v75_v31  ;;  %v89_v39 = vmax.f32 %v81_v32, 0.0 }
  0x15   :  { %v127_v34 = vadd.f32 %v85_v29, %v84_v26  ;;  %v90_v41 = vmax.f32 %v82_v35, 0.0 }
  0x16   :  { %v91_v43 = vmax.f32 %v83_v38, 0.0 }
  0x17   :  { %v128_v37 = vadd.f32 %v127_v34, %v86_v30 }
  0x19   :  { %v129_v40 = vadd.f32 %v128_v37, %v87_v33 }
  0x1b   :  { %v130_v42 = vadd.f32 %v129_v40, %v88_v36 }
  0x1d   :  { %v131_v44 = vadd.f32 %v130_v42, %v89_v39 }
  0x1f   :  { %v132_v45 = vadd.f32 %v131_v44, %v90_v41 }
  0x21   :  { %v133_v46 = vadd.f32 %v132_v45, %v91_v43 }
  0x23   :  { %134 = vadd.xlane.f32.xlu0 %v133_v46 }
  0x96   :  { %v135_v47 = vpop.xlane.xlu0 %134 }
  0x97   :  { %v136_v48 = vrot.slane %v135_v47, 4 }
  0x99   :  { %v137_v49 = vadd.f32 %v136_v48, %v135_v47 }
  0x9b   :  { %v138_v50 = vrot.slane %v137_v49, 2 }
  0x9d   :  { %v139_v51 = vadd.f32 %v138_v50, %v137_v49 }
  0x9f   :  { %v140_v52 = vrot.slane %v139_v51, 1 }
  0xa1   :  { %v141_v53 = vadd.f32 %v140_v52, %v139_v51 }
  0xa3   :  { %162 = vpush %v141_v53 }
  0xd4   :  { %s163_s20 = spop %162 }
  0xd5   :  { %144 = sst [smem:[#allocation8]] %s163_s20 }
  0xd6   :  { %153 = dma.smem_to_hbm %s235_s21, 16, %s151_s19, [#allocation5]  }
  0xd7   :  { %231 = dma.done.wait [#allocation5], 16  }
  0xd8   :  { %232 = vsyncadd [#allocation5], 4294967280 }
  0xd9   :  { %158 = sfence }
  0xda   :  { %159 = vsyncpa [#allocation4], 1 }
  0xdb   :  { %160 = vsyncpa [#allocation7], 1 }
  0xdc   :  { %161 = vsyncpa [#allocation5], 1 }

</bundles_post_ra>
